<compile_context>
chip_gen: v6e
topology: v6e:2x2x1
jax: 0.10.0
libtpu: 0.0.40
codegen_flags: <defaults>
</compile_context>

<pallas_src>
import math
from functools import partial
from typing import NamedTuple

import numpy as np
import jax
import jax.numpy as jnp
from jax import lax
from jax.experimental import pallas as pl
from jax.experimental.pallas import tpu as pltpu


# ----------------------------------------------------------------------------
# Pallas kernel: tiled matmul + bias + (optional) LeakyReLU epilogue.
# Every Conv2d is lowered to im2col (glue) followed by this kernel.
# ----------------------------------------------------------------------------
def _mm_bias_act_kernel(x_ref, w_ref, b_ref, o_ref, *, slope, nk):
    part = jnp.dot(x_ref[...], w_ref[...], preferred_element_type=jnp.float32)

    if nk == 1:
        # Single full-K block: no k-loop, no accumulator, fused epilogue.
        y = part + b_ref[...]
        if slope is not None:
            y = jnp.where(y >= 0.0, y, y * slope)
        o_ref[...] = y.astype(o_ref.dtype)
    else:
        k = pl.program_id(2)

        @pl.when(k == 0)
        def _():
            o_ref[...] = part

        @pl.when(k != 0)
        def _():
            o_ref[...] = o_ref[...] + part

        @pl.when(k == nk - 1)
        def _():
            y = o_ref[...] + b_ref[...]
            if slope is not None:
                y = jnp.where(y >= 0.0, y, y * slope)
            o_ref[...] = y.astype(o_ref.dtype)


def _round_up(x, m):
    return ((x + m - 1) // m) * m


_MAX_SINGLE_K = 2048


def _k_tiling(K):
    """Returns (Kp, TK). Skip K tiling entirely for small K."""
    Kp = _round_up(K, 128)
    if Kp <= _MAX_SINGLE_K:
        return Kp, Kp
    TK = 1024
    return _round_up(Kp, TK), TK


def _n_tiling(N):
    """Returns (Np, TN) with TN | Np and TN a multiple of 128 (lane-dense)."""
    Np = _round_up(N, 128)
    for TN in (512, 384, 256, 128):
        if Np % TN == 0:
            return Np, TN
    return Np, 128  # unreachable (Np is a multiple of 128)


class ConvSpec(NamedTuple):  # static conv metadata (kept out of the jit pytree)
    kh: int
    kw: int
    cin: int
    cout: int
    pad: int


def matmul_bias_act(x, w_pad, b_pad, spec, slope):
    """x:(M,K) f32 im2col, w_pad:(Kp,Np) bf16 (pre-padded at init),
    b_pad:(1,Np) f32 -> (M, cout) f32 with fused bias + LeakyReLU."""
    M, K = x.shape
    Kp, TK = _k_tiling(K)
    Np, TN = _n_tiling(spec.cout)
    assert (Kp, Np) == w_pad.shape, (Kp, Np, w_pad.shape)

    TM = min(256, _round_up(M, 16))       # shrink M tile for tiny-M layers
    Mp = _round_up(M, TM)
    nk = Kp // TK

    xp = jnp.pad(x, ((0, Mp - M), (0, Kp - K))).astype(jnp.bfloat16)

    out = pl.pallas_call(
        partial(_mm_bias_act_kernel, slope=slope, nk=nk),
        out_shape=jax.ShapeDtypeStruct((Mp, Np), jnp.float32),
        grid=(Mp // TM, Np // TN, nk),
        in_specs=[
            pl.BlockSpec((TM, TK), lambda i, j, k: (i, k)),
            pl.BlockSpec((TK, TN), lambda i, j, k: (k, j)),
            pl.BlockSpec((1, TN), lambda i, j, k: (0, j)),
        ],
        out_specs=pl.BlockSpec((TM, TN), lambda i, j, k: (i, j)),
        compiler_params=pltpu.CompilerParams(
            dimension_semantics=("parallel", "parallel", "arbitrary")),
    )(xp, w_pad, b_pad)
    return out[:M, :spec.cout]


# ----------------------------------------------------------------------------
# Conv2d (kxk, stride 1) = im2col (glue) + Pallas matmul.
# Weight layout HWIO flattened to (kh*kw*Cin, Cout); patch order matches.
# ----------------------------------------------------------------------------
def conv2d(x, w_mat, b_row, spec, slope=0.01):
    N, H, W, C = x.shape
    kh, kw, pad = spec.kh, spec.kw, spec.pad
    Ho = H + 2 * pad - kh + 1
    Wo = W + 2 * pad - kw + 1
    xp = jnp.pad(x, ((0, 0), (pad, pad), (pad, pad), (0, 0)))
    # TODO(synk): for large-spatial layers, fold the (dy,dx) patch offsets into
    # the matmul's K grid axis via the x BlockSpec index_map instead of
    # materializing the kh*kw-expanded im2col copy in HBM.
    cols = []
    for dy in range(kh):
        for dx in range(kw):
            cols.append(lax.slice(xp, (0, dy, dx, 0), (N, dy + Ho, dx + Wo, C)))
    patches = jnp.concatenate(cols, axis=-1).reshape(N * Ho * Wo, kh * kw * C)
    out = matmul_bias_act(patches, w_mat, b_row, spec, slope)
    return out.reshape(N, Ho, Wo, spec.cout)


# ----------------------------------------------------------------------------
# Bilinear x2 upsample, align_corners=True, as gather-free separable matmuls.
# ----------------------------------------------------------------------------
def _interp_matrix(si, so):
    if si == 1:
        return jnp.ones((so, 1), jnp.float32)
    pos = np.arange(so, dtype=np.float64) * (si - 1) / (so - 1)
    i0 = np.clip(np.floor(pos).astype(np.int64), 0, si - 1)
    i1 = np.clip(i0 + 1, 0, si - 1)
    f = pos - i0
    mat = np.zeros((so, si), np.float32)
    mat[np.arange(so), i0] += (1.0 - f)
    mat[np.arange(so), i1] += f
    return jnp.asarray(mat)


def upsample_bilinear_x2(x):
    """nn.Upsample(scale_factor=2, mode='bilinear', align_corners=True)."""
    N, H, W, C = x.shape
    Uy = _interp_matrix(H, 2 * H)
    Ux = _interp_matrix(W, 2 * W)
    x = jnp.einsum('oh,nhwc->nowc', Uy, x)
    x = jnp.einsum('ow,nhwc->nhoc', Ux, x)
    return x


# ----------------------------------------------------------------------------
# Parameter construction: He-normal weights, zero bias, pre-packed into the
# padded (Kp, Np) bf16 matmul layout once at init.
# ----------------------------------------------------------------------------
def make_conv_params(key, cin, cout, k=3, pad=1):
    std = math.sqrt(2.0 / (k * k * cin))
    w = jax.random.normal(key, (k, k, cin, cout), jnp.float32) * std   # HWIO
    b = jnp.zeros((cout,), jnp.float32)
    K = k * k * cin
    Kp, _ = _k_tiling(K)
    Np, _ = _n_tiling(cout)
    w_mat = jnp.pad(w.reshape(K, cout),
                    ((0, Kp - K), (0, Np - cout))).astype(jnp.bfloat16)
    b_row = jnp.pad(b, ((0, Np - cout),)).reshape(1, Np)
    return (w_mat, b_row), ConvSpec(kh=k, kw=k, cin=cin, cout=cout, pad=pad)


# ----------------------------------------------------------------------------
# `Up` forward (matches the PyTorch module, LeakyReLU default slope 0.01).
# ----------------------------------------------------------------------------
def _up_forward(specs, weights, x1_nchw, x2_nchw=None):
    x1 = jnp.transpose(x1_nchw, (0, 2, 3, 1))          # NCHW -> NHWC
    x1 = upsample_bilinear_x2(x1)
    x1 = conv2d(x1, *weights["c1"], specs["c1"])        # conv + LeakyReLU
    x1 = conv2d(x1, *weights["c2"], specs["c2"])        # conv + LeakyReLU
    if x2_nchw is not None:
        x2 = jnp.transpose(x2_nchw, (0, 2, 3, 1))
        dY = x2.shape[1] - x1.shape[1]
        dX = x2.shape[2] - x1.shape[2]
        x1 = jnp.pad(x1, ((0, 0), (dY // 2, dY - dY // 2),
                          (dX // 2, dX - dX // 2), (0, 0)))
        x = jnp.concatenate([x2, x1], axis=-1)          # cat([x2, x1], dim=C)
    else:
        x = x1
    feat = conv2d(x, *weights["feat"], specs["feat"])   # conv + LeakyReLU
    return jnp.transpose(feat, (0, 3, 1, 2))            # NHWC -> NCHW


class UpPallas:
    """Pallas equivalent of the PyTorch `Up(in, feat, out, bilinear=True)`."""

    def __init__(self, key, in_channels, feat_channels, out_channels):
        k1, k2, k3 = jax.random.split(key, 3)
        w1, s1 = make_conv_params(k1, in_channels, out_channels)
        w2, s2 = make_conv_params(k2, out_channels, out_channels)
        w3, s3 = make_conv_params(k3, feat_channels + out_channels, out_channels)
        self.weights = {"c1": w1, "c2": w2, "feat": w3}
        self.specs = {"c1": s1, "c2": s2, "feat": s3}
        self._fwd = jax.jit(partial(_up_forward, self.specs))

    def __call__(self, x1, x2=None):
        return self._fwd(self.weights, x1, x2)


if __name__ == "__main__":
    key = jax.random.PRNGKey(0)
    pkey, xkey1, xkey2 = jax.random.split(key, 3)

    # Small shapes consistent with the module: x1 upsamples 8x8 -> 16x16 and
    # must match x2's spatial size; feat conv sees feat_ch + out_ch channels.
    in_ch, feat_ch, out_ch = 8, 8, 16
    x1 = jax.random.normal(xkey1, (2, in_ch, 8, 8), jnp.float32)       # NCHW
    x2 = jax.random.normal(xkey2, (2, feat_ch, 16, 16), jnp.float32)   # skip

    model = UpPallas(pkey, in_ch, feat_ch, out_ch)
    out = model(x1, x2)
    out = jax.block_until_ready(out)

    assert out.shape == (2, out_ch, 16, 16), out.shape
    assert bool(jnp.all(jnp.isfinite(out)))
    print("KERNEL_OK")
</pallas_src>

<mosaic_0001>
module attributes {stable_mosaic.version = 11 : i64} {
  func.func @_mm_bias_act_kernel(%arg0: i32, %arg1: i32, %arg2: i32, %arg3: memref<256x128xbf16, #tpu.memory_space<vmem>>, %arg4: memref<128x128xbf16, #tpu.memory_space<vmem>>, %arg5: memref<1x128xf32, #tpu.memory_space<vmem>>, %arg6: memref<256x128xf32, #tpu.memory_space<vmem>>) attributes {dimension_semantics = [#tpu.dimension_semantics<parallel>, #tpu.dimension_semantics<parallel>, #tpu.dimension_semantics<arbitrary>], iteration_bounds = array<i64: 2, 1, 1>, scalar_prefetch = 0 : i64, scratch_operands = 0 : i64, tpu.core_type = #tpu.core_type<tc>, window_params = [{transform_indices = @transform_0, window_bounds = array<i64: 256, 128>}, {transform_indices = @transform_1, window_bounds = array<i64: 128, 128>}, {transform_indices = @transform_2, window_bounds = array<i64: 1, 128>}, {transform_indices = @transform_3, window_bounds = array<i64: 256, 128>}]} {
    %c0 = arith.constant 0 : index
    %c0_0 = arith.constant 0 : index
    %0 = vector.load %arg3[%c0, %c0_0] : memref<256x128xbf16, #tpu.memory_space<vmem>>, vector<256x128xbf16>
    %c0_1 = arith.constant 0 : index
    %c0_2 = arith.constant 0 : index
    %1 = vector.load %arg4[%c0_1, %c0_2] : memref<128x128xbf16, #tpu.memory_space<vmem>>, vector<128x128xbf16>
    %cst = arith.constant dense<0.000000e+00> : vector<256x128xf32>
    %2 = tpu.matmul %0, %1, %cst {dimension_numbers = #tpu.dot_dimension_numbers<[1], [0], [0], [1], [0, 0, 1, 1], [], []>} : vector<256x128xbf16>, vector<128x128xbf16>, vector<256x128xf32> -> vector<256x128xf32>
    %c0_3 = arith.constant 0 : index
    %c0_4 = arith.constant 0 : index
    %3 = vector.load %arg5[%c0_3, %c0_4] : memref<1x128xf32, #tpu.memory_space<vmem>>, vector<1x128xf32>
    %4 = vector.broadcast %3 : vector<1x128xf32> to vector<256x128xf32>
    %5 = arith.addf %2, %4 : vector<256x128xf32>
    %cst_5 = arith.constant 0.000000e+00 : f32
    %6 = vector.broadcast %cst_5 : f32 to vector<256x128xf32>
    %7 = arith.cmpf oge, %5, %6 : vector<256x128xf32>
    %cst_6 = arith.constant 0.00999999977 : f32
    %8 = vector.broadcast %cst_6 : f32 to vector<256x128xf32>
    %9 = arith.mulf %5, %8 : vector<256x128xf32>
    %10 = arith.select %7, %5, %9 : vector<256x128xi1>, vector<256x128xf32>
    %c0_7 = arith.constant 0 : index
    %c0_8 = arith.constant 0 : index
    %11 = vector.load %arg6[%c0_7, %c0_8] : memref<256x128xf32, #tpu.memory_space<vmem>>, vector<256x128xf32>
    tpu.vector_store %arg6[%c0_7, %c0_8], %10 {strides = array<i32>} : memref<256x128xf32, #tpu.memory_space<vmem>>, vector<256x128xf32>,
    return
  }
  func.func @transform_0(%arg0: i32, %arg1: i32, %arg2: i32) -> (i32, i32) {
    %c0_i32 = arith.constant 0 : i32
    return %arg0, %arg2 : i32, i32
  }
  func.func @transform_1(%arg0: i32, %arg1: i32, %arg2: i32) -> (i32, i32) {
    %c0_i32 = arith.constant 0 : i32
    return %arg2, %arg1 : i32, i32
  }
  func.func @transform_2(%arg0: i32, %arg1: i32, %arg2: i32) -> (i32, i32) {
    %c0_i32 = arith.constant 0 : i32
    %c0_i32_0 = arith.constant 0 : i32
    return %c0_i32, %arg1 : i32, i32
  }
  func.func @transform_3(%arg0: i32, %arg1: i32, %arg2: i32) -> (i32, i32) {
    %c0_i32 = arith.constant 0 : i32
    return %arg0, %arg1 : i32, i32
  }
}

module attributes {stable_mosaic.version = 11 : i64} {
  func.func @_mm_bias_act_kernel(%arg0: i32, %arg1: i32, %arg2: i32, %arg3: memref<256x256xbf16, #tpu.memory_space<vmem>>, %arg4: memref<256x128xbf16, #tpu.memory_space<vmem>>, %arg5: memref<1x128xf32, #tpu.memory_space<vmem>>, %arg6: memref<256x128xf32, #tpu.memory_space<vmem>>) attributes {dimension_semantics = [#tpu.dimension_semantics<parallel>, #tpu.dimension_semantics<parallel>, #tpu.dimension_semantics<arbitrary>], iteration_bounds = array<i64: 2, 1, 1>, scalar_prefetch = 0 : i64, scratch_operands = 0 : i64, tpu.core_type = #tpu.core_type<tc>, window_params = [{transform_indices = @transform_0, window_bounds = array<i64: 256, 256>}, {transform_indices = @transform_1, window_bounds = array<i64: 256, 128>}, {transform_indices = @transform_2, window_bounds = array<i64: 1, 128>}, {transform_indices = @transform_3, window_bounds = array<i64: 256, 128>}]} {
    %c0 = arith.constant 0 : index
    %c0_0 = arith.constant 0 : index
    %0 = vector.load %arg3[%c0, %c0_0] : memref<256x256xbf16, #tpu.memory_space<vmem>>, vector<256x256xbf16>
    %c0_1 = arith.constant 0 : index
    %c0_2 = arith.constant 0 : index
    %1 = vector.load %arg4[%c0_1, %c0_2] : memref<256x128xbf16, #tpu.memory_space<vmem>>, vector<256x128xbf16>
    %cst = arith.constant dense<0.000000e+00> : vector<256x128xf32>
    %2 = tpu.matmul %0, %1, %cst {dimension_numbers = #tpu.dot_dimension_numbers<[1], [0], [0], [1], [0, 0, 1, 1], [], []>} : vector<256x256xbf16>, vector<256x128xbf16>, vector<256x128xf32> -> vector<256x128xf32>
    %c0_3 = arith.constant 0 : index
    %c0_4 = arith.constant 0 : index
    %3 = vector.load %arg5[%c0_3, %c0_4] : memref<1x128xf32, #tpu.memory_space<vmem>>, vector<1x128xf32>
    %4 = vector.broadcast %3 : vector<1x128xf32> to vector<256x128xf32>
    %5 = arith.addf %2, %4 : vector<256x128xf32>
    %cst_5 = arith.constant 0.000000e+00 : f32
    %6 = vector.broadcast %cst_5 : f32 to vector<256x128xf32>
    %7 = arith.cmpf oge, %5, %6 : vector<256x128xf32>
    %cst_6 = arith.constant 0.00999999977 : f32
    %8 = vector.broadcast %cst_6 : f32 to vector<256x128xf32>
    %9 = arith.mulf %5, %8 : vector<256x128xf32>
    %10 = arith.select %7, %5, %9 : vector<256x128xi1>, vector<256x128xf32>
    %c0_7 = arith.constant 0 : index
    %c0_8 = arith.constant 0 : index
    %11 = vector.load %arg6[%c0_7, %c0_8] : memref<256x128xf32, #tpu.memory_space<vmem>>, vector<256x128xf32>
    tpu.vector_store %arg6[%c0_7, %c0_8], %10 {strides = array<i32>} : memref<256x128xf32, #tpu.memory_space<vmem>>, vector<256x128xf32>,
    return
  }
  func.func @transform_0(%arg0: i32, %arg1: i32, %arg2: i32) -> (i32, i32) {
    %c0_i32 = arith.constant 0 : i32
    return %arg0, %arg2 : i32, i32
  }
  func.func @transform_1(%arg0: i32, %arg1: i32, %arg2: i32) -> (i32, i32) {
    %c0_i32 = arith.constant 0 : i32
    return %arg2, %arg1 : i32, i32
  }
  func.func @transform_2(%arg0: i32, %arg1: i32, %arg2: i32) -> (i32, i32) {
    %c0_i32 = arith.constant 0 : i32
    %c0_i32_0 = arith.constant 0 : i32
    return %c0_i32, %arg1 : i32, i32
  }
  func.func @transform_3(%arg0: i32, %arg1: i32, %arg2: i32) -> (i32, i32) {
    %c0_i32 = arith.constant 0 : i32
    return %arg0, %arg1 : i32, i32
  }
}

</mosaic_0001>

<bundles_post_ra>
// kernel: _up_forward.3
= control target key start
LH: loop header
LB: loop body
LE: loop exit
PB: predicated region body
PF: predicated region fallthrough
CT: control target
= control target key end

     0   :  { %s1077_s12 = smov 0   ;;  %s1079_s13 = smov 0   ;;  %s1227_s0 = inlined_call_operand.vmem [shape: bf16[512,128], index: 0, kind: input, shape index: {}]   ;;  %s1228_s1 = inlined_call_operand.vmem [shape: bf16[128,128], index: 1, kind: input, shape index: {}]   ;;  %s1229_s2 = inlined_call_operand.vmem [shape: f32[1,128], index: 2, kind: input, shape index: {}]   ;;  %s1230_s3 = inlined_call_operand.vmem [shape: f32[512,128], index: 3, kind: output, shape index: {}]  }
   0x1   :  { %s1081_s14 = smov 0  }
   0x2 LB: > { %s32_s15 = sadd.s32 1, %s1051_s13  ;;  %p865_p0 = scmp.ge.s32.totalorder %s1055_s14, 1  ;;  %s1055_s14 = sphi %s1081_s14, %s13_s14   ;;  %s1051_s13 = sphi %s1079_s13, %s1232_s13   ;;  %s1047_s12 = sphi %s1077_s12, %s1231_s12  }
   0x3   : > { %p34_p1 = scmp.ge.s32.totalorder %s32_s15, 2  ;;  %p188_p2 = scmp.lt.s32.totalorder %s1055_s14, 3 }
   0x5   : > { %s1234_s15 = smov (%p34_p1, %s32_s15), 0  ;;  %p189_p3 = pnand %p865_p0, %p188_p2 }
   0x6   : > { %s866_s18 = sshll.u32 (!%p189_p3), %s1047_s12, 5 }
   0x7   : > { %192 = sbr.rel (%p189_p3) target bundleno = 275 (0x113), region = 32  ;;  %p230_p4 = scmp.lt.s32.totalorder (!%p189_p3), %s866_s18, 63 }
   0xc   : > { %v1009_v0 = vld [vmem:[%s1228_s1 + $0x38] sm:$0xff]   ;;  %v1010_v1 = vld [vmem:[%s1228_s1 + $0x30] sm:$0xff]   ;;  %s1236_s18 = smov (!%p230_p4, %s866_s18), 63  ;;  %v1011_v2 = vld [vmem:[%s1228_s1 + $0x28] sm:$0xff]  }
   0xd   : > { %921 = vmatprep.subr.bf16.mxu0 %v1009_v0  ;;  %969 = vmatprep.subr.bf16.mxu1 %v1009_v0  ;;  %s867_s23 = sshll.u32 %s1236_s18, 2  ;;  %v1012_v3 = vld [vmem:[%s1228_s1 + $0x20] sm:$0xff]   ;;  %v1013_v6 = vld [vmem:[%s1228_s1 + $0x18] sm:$0xff]   ;;  %v1014_v7 = vld [vmem:[%s1228_s1 + $0x10] sm:$0xff]   ;;  %s869_s12 = sshll.u32 %s1236_s18, 3 }
   0xe   : > { %922 = vmatpush3.bf16.msra.mxu0 %v1009_v0  ;;  %977 = vmatpush3.bf16.msra.mxu1 %v1009_v0  ;;  %s1110_s26 = scalar_lea.vmem %s1227_s0, %s867_s23  ;;  %v1015_v8 = vld [vmem:[%s1228_s1 + $0x8] sm:$0xff]   ;;  %v1016_v9 = vld [vmem:[%s1228_s1] sm:$0xff]   ;;  %s1154_s19 = scalar_lea.vmem %s1230_s3, %s869_s12 }
   0xf   : > { %923 = vmatprep.subr.bf16.mxu0 %v1010_v1  ;;  %970 = vmatprep.subr.bf16.mxu1 %v1010_v1  ;;  %v1017_v4 = vld [vmem:[%s1110_s26] sm:$0xff]   ;;  %v1019_v10 = vld [vmem:[%s1110_s26 + $0x8] sm:$0xff]   ;;  %v1021_v12 = vld [vmem:[%s1110_s26 + $0x10] sm:$0xff]  }
  0x10   : > { %v1018_v5 = vld [vmem:[%s1110_s26 + $0x40] sm:$0xff]   ;;  %937 = vmatprep.mubr.bf16.mxu0 %v1017_v4  ;;  %v1020_v11 = vld [vmem:[%s1110_s26 + $0x48] sm:$0xff]   ;;  %v1022_v13 = vld [vmem:[%s1110_s26 + $0x50] sm:$0xff]  }
  0x11   : > { %953 = vmatprep.mubr.bf16.mxu1 %v1018_v5  ;;  %v1023_v14 = vld [vmem:[%s1110_s26 + $0x18] sm:$0xff]   ;;  %v1025_v16 = vld [vmem:[%s1110_s26 + $0x20] sm:$0xff]   ;;  %v1027_v18 = vld [vmem:[%s1110_s26 + $0x28] sm:$0xff]  }
  0x12   : > { %924 = vmatpush3.bf16.msra.mxu0 %v1010_v1  ;;  %978 = vmatpush3.bf16.msra.mxu1 %v1010_v1  ;;  %v1024_v15 = vld [vmem:[%s1110_s26 + $0x58] sm:$0xff]   ;;  %v1026_v17 = vld [vmem:[%s1110_s26 + $0x60] sm:$0xff]   ;;  %v1028_v19 = vld [vmem:[%s1110_s26 + $0x68] sm:$0xff]  }
  0x13   : > { %925 = vmatprep.subr.bf16.mxu0 %v1011_v2  ;;  %971 = vmatprep.subr.bf16.mxu1 %v1011_v2  ;;  %v1029_v20 = vld [vmem:[%s1110_s26 + $0x30] sm:$0xff]   ;;  %v1031_v22 = vld [vmem:[%s1110_s26 + $0x38] sm:$0xff]   ;;  %v1146_v24 = vld [vmem:[%s1229_s2] ss:$0 sm:$0xff] }
  0x14   : > { %v1030_v21 = vld [vmem:[%s1110_s26 + $0x70] sm:$0xff]   ;;  %v1032_v23 = vld [vmem:[%s1110_s26 + $0x78] sm:$0xff]  }
  0x16   : > { %926 = vmatpush3.bf16.msra.mxu0 %v1011_v2  ;;  %979 = vmatpush3.bf16.msra.mxu1 %v1011_v2 }
  0x17   : > { %927 = vmatprep.subr.bf16.mxu0 %v1012_v3  ;;  %972 = vmatprep.subr.bf16.mxu1 %v1012_v3 }
  0x1a   : > { %928 = vmatpush3.bf16.msra.mxu0 %v1012_v3  ;;  %980 = vmatpush3.bf16.msra.mxu1 %v1012_v3 }
  0x1b   : > { %929 = vmatprep.subr.bf16.mxu0 %v1013_v6  ;;  %973 = vmatprep.subr.bf16.mxu1 %v1013_v6 }
  0x1e   : > { %930 = vmatpush3.bf16.msra.mxu0 %v1013_v6  ;;  %981 = vmatpush3.bf16.msra.mxu1 %v1013_v6 }
  0x1f   : > { %931 = vmatprep.subr.bf16.mxu0 %v1014_v7  ;;  %974 = vmatprep.subr.bf16.mxu1 %v1014_v7 }
  0x22   : > { %932 = vmatpush3.bf16.msra.mxu0 %v1014_v7  ;;  %982 = vmatpush3.bf16.msra.mxu1 %v1014_v7 }
  0x23   : > { %933 = vmatprep.subr.bf16.mxu0 %v1015_v8  ;;  %975 = vmatprep.subr.bf16.mxu1 %v1015_v8 }
  0x26   : > { %934 = vmatpush3.bf16.msra.mxu0 %v1015_v8  ;;  %983 = vmatpush3.bf16.msra.mxu1 %v1015_v8 }
  0x27   : > { %935 = vmatprep.subr.bf16.mxu0 %v1016_v9  ;;  %976 = vmatprep.subr.bf16.mxu1 %v1016_v9 }
  0x2a   : > { %936 = vmatpush3.bf16.msra.mxu0 %v1016_v9  ;;  %984 = vmatpush3.bf16.msra.mxu1 %v1016_v9 }
  0x2d   : > { %938 = vmatmul.mubr.bf16.vlgmr.msra.gmra.mxu0 %v1019_v10  ;;  %954 = vmatmul.mubr.bf16.vlgmr.msra.gmra.mxu1 %v1020_v11 }
  0x2e   : > { %941 = vmatprep.mubr.bf16.mxu0 %v1021_v12  ;;  %957 = vmatprep.mubr.bf16.mxu1 %v1022_v13 }
  0x35   : > { %942 = vmatmul.mubr.bf16.gmra.mxu0 %v1023_v14  ;;  %958 = vmatmul.mubr.bf16.gmra.mxu1 %v1024_v15 }
  0x36   : > { %945 = vmatprep.mubr.bf16.mxu0 %v1025_v16  ;;  %961 = vmatprep.mubr.bf16.mxu1 %v1026_v17 }
  0x3d   : > { %946 = vmatmul.mubr.bf16.gmra.mxu0 %v1027_v18  ;;  %962 = vmatmul.mubr.bf16.gmra.mxu1 %v1028_v19 }
  0x3e   : > { %949 = vmatprep.mubr.bf16.mxu0 %v1029_v20  ;;  %965 = vmatprep.mubr.bf16.mxu1 %v1030_v21 }
  0x45   : > { %950 = vmatmul.mubr.bf16.gmra.mxu0 %v1031_v22  ;;  %966 = vmatmul.mubr.bf16.gmra.mxu1 %v1032_v23 }
  0xed   : > { %v939_v25 = vpop.f32.mrf.mxu0  ;;  %v955_v26 = vpop.f32.mrf.mxu1 }
  0xee   : > { %v502_v27 = vadd.f32 %v939_v25, %v1146_v24  ;;  %v566_v28 = vadd.f32 %v955_v26, %v1146_v24 }
  0xef   : > { %v493_v29 = vpop.f32.mrf.mxu0  ;;  %v557_v30 = vpop.f32.mrf.mxu1 }
  0xf0   : > { %vm622_vm0 = vcmp.ge.f32.partialorder %v502_v27, 0.0  ;;  %v654_v31 = vmul.f32 0.01, %v502_v27  ;;  %vm638_vm1 = vcmp.ge.f32.partialorder %v566_v28, 0.0  ;;  %v670_v32 = vmul.f32 0.01, %v566_v28 }
  0xf1   : > { %v494_v33 = vadd.f32 %v1146_v24, %v493_v29  ;;  %v558_v34 = vadd.f32 %v1146_v24, %v557_v30  ;;  %v940_v35 = vpop.f32.mrf.mxu0  ;;  %v956_v36 = vpop.f32.mrf.mxu1 }
  0xf2   : > { %v686_v37 = vsel %vm622_vm0, %v502_v27, %v654_v31  ;;  %v702_v38 = vsel %vm638_vm1, %v566_v28, %v670_v32  ;;  %v505_v39 = vadd.f32 %v940_v35, %v1146_v24  ;;  %v569_v40 = vadd.f32 %v956_v36, %v1146_v24 }
  0xf3   : > { %718 = vst [vmem:[%s1154_s19 + $0x10] sm:$0xff] %v686_v37  ;;  %734 = vst [vmem:[%s1154_s19 + $0x90] sm:$0xff] %v702_v38  ;;  %vm620_vm2 = vcmp.ge.f32.partialorder %v494_v33, 0.0  ;;  %v652_v41 = vmul.f32 0.01, %v494_v33  ;;  %vm636_vm3 = vcmp.ge.f32.partialorder %v558_v34, 0.0  ;;  %v496_v43 = vpop.f32.mrf.mxu0  ;;  %v560_v44 = vpop.f32.mrf.mxu1 }
  0xf4   : > { %v668_v42 = vmul.f32 0.01, %v558_v34  ;;  %vm623_vm4 = vcmp.ge.f32.partialorder %v505_v39, 0.0  ;;  %v655_v45 = vmul.f32 0.01, %v505_v39  ;;  %vm639_vm5 = vcmp.ge.f32.partialorder %v569_v40, 0.0 }
  0xf5   : > { %v671_v46 = vmul.f32 0.01, %v569_v40  ;;  %v684_v47 = vsel %vm620_vm2, %v494_v33, %v652_v41  ;;  %v497_v49 = vadd.f32 %v1146_v24, %v496_v43  ;;  %v561_v50 = vadd.f32 %v1146_v24, %v560_v44  ;;  %v943_v51 = vpop.f32.mrf.mxu0  ;;  %v959_v52 = vpop.f32.mrf.mxu1 }
  0xf6   : > { %v700_v48 = vsel %vm636_vm3, %v558_v34, %v668_v42  ;;  %716 = vst [vmem:[%s1154_s19] sm:$0xff] %v684_v47  ;;  %v687_v53 = vsel %vm623_vm4, %v505_v39, %v655_v45  ;;  %v518_v55 = vadd.f32 %v943_v51, %v1146_v24  ;;  %v582_v56 = vadd.f32 %v959_v52, %v1146_v24 }
  0xf7   : > { %732 = vst [vmem:[%s1154_s19 + $0x80] sm:$0xff] %v700_v48  ;;  %v703_v54 = vsel %vm639_vm5, %v569_v40, %v671_v46  ;;  %719 = vst [vmem:[%s1154_s19 + $0x18] sm:$0xff] %v687_v53  ;;  %vm621_vm6 = vcmp.ge.f32.partialorder %v497_v49, 0.0  ;;  %v653_v57 = vmul.f32 0.01, %v497_v49  ;;  %vm637_vm7 = vcmp.ge.f32.partialorder %v561_v50, 0.0  ;;  %v509_v59 = vpop.f32.mrf.mxu0  ;;  %v573_v60 = vpop.f32.mrf.mxu1 }
  0xf8   : > { %735 = vst [vmem:[%s1154_s19 + $0x98] sm:$0xff] %v703_v54  ;;  %v669_v58 = vmul.f32 0.01, %v561_v50  ;;  %vm626_vm8 = vcmp.ge.f32.partialorder %v518_v55, 0.0  ;;  %v658_v61 = vmul.f32 0.01, %v518_v55  ;;  %v510_v1 = vadd.f32 %v1146_v24, %v509_v59 }
  0xf9   : > { %vm642_vm9 = vcmp.ge.f32.partialorder %v582_v56, 0.0  ;;  %v674_v62 = vmul.f32 0.01, %v582_v56  ;;  %v685_v63 = vsel %vm621_vm6, %v497_v49, %v653_v57  ;;  %v574_v2 = vadd.f32 %v1146_v24, %v573_v60  ;;  %v944_v3 = vpop.f32.mrf.mxu0  ;;  %v960_v4 = vpop.f32.mrf.mxu1 }
  0xfa   : > { %v701_v0 = vsel %vm637_vm7, %v561_v50, %v669_v58  ;;  %717 = vst [vmem:[%s1154_s19 + $0x8] sm:$0xff] %v685_v63  ;;  %v690_v5 = vsel %vm626_vm8, %v518_v55, %v658_v61  ;;  %v521_v7 = vadd.f32 %v944_v3, %v1146_v24  ;;  %v585_v8 = vadd.f32 %v960_v4, %v1146_v24 }
  0xfb   : > { %733 = vst [vmem:[%s1154_s19 + $0x88] sm:$0xff] %v701_v0  ;;  %v706_v6 = vsel %vm642_vm9, %v582_v56, %v674_v62  ;;  %722 = vst [vmem:[%s1154_s19 + $0x30] sm:$0xff] %v690_v5  ;;  %vm624_vm10 = vcmp.ge.f32.partialorder %v510_v1, 0.0  ;;  %v656_v9 = vmul.f32 0.01, %v510_v1  ;;  %vm640_vm11 = vcmp.ge.f32.partialorder %v574_v2, 0.0  ;;  %v512_v11 = vpop.f32.mrf.mxu0  ;;  %v576_v12 = vpop.f32.mrf.mxu1 }
  0xfc   : > { %738 = vst [vmem:[%s1154_s19 + $0xb0] sm:$0xff] %v706_v6  ;;  %v672_v10 = vmul.f32 0.01, %v574_v2  ;;  %vm627_vm12 = vcmp.ge.f32.partialorder %v521_v7, 0.0  ;;  %v659_v13 = vmul.f32 0.01, %v521_v7  ;;  %v513_v17 = vadd.f32 %v1146_v24, %v512_v11 }
  0xfd   : > { %vm643_vm13 = vcmp.ge.f32.partialorder %v585_v8, 0.0  ;;  %v675_v14 = vmul.f32 0.01, %v585_v8  ;;  %v688_v15 = vsel %vm624_vm10, %v510_v1, %v656_v9  ;;  %v577_v18 = vadd.f32 %v1146_v24, %v576_v12  ;;  %v947_v19 = vpop.f32.mrf.mxu0  ;;  %v963_v20 = vpop.f32.mrf.mxu1 }
  0xfe   : > { %v704_v16 = vsel %vm640_vm11, %v574_v2, %v672_v10  ;;  %720 = vst [vmem:[%s1154_s19 + $0x20] sm:$0xff] %v688_v15  ;;  %v691_v21 = vsel %vm627_vm12, %v521_v7, %v659_v13  ;;  %v534_v23 = vadd.f32 %v947_v19, %v1146_v24  ;;  %v598_v25 = vadd.f32 %v963_v20, %v1146_v24 }
  0xff   : > { %736 = vst [vmem:[%s1154_s19 + $0xa0] sm:$0xff] %v704_v16  ;;  %v707_v22 = vsel %vm643_vm13, %v585_v8, %v675_v14  ;;  %723 = vst [vmem:[%s1154_s19 + $0x38] sm:$0xff] %v691_v21  ;;  %vm625_vm14 = vcmp.ge.f32.partialorder %v513_v17, 0.0  ;;  %v657_v26 = vmul.f32 0.01, %v513_v17  ;;  %vm641_vm15 = vcmp.ge.f32.partialorder %v577_v18, 0.0  ;;  %v525_v28 = vpop.f32.mrf.mxu0  ;;  %v589_v29 = vpop.f32.mrf.mxu1 }
 0x100   : > { %739 = vst [vmem:[%s1154_s19 + $0xb8] sm:$0xff] %v707_v22  ;;  %v673_v27 = vmul.f32 0.01, %v577_v18  ;;  %vm630_vm0 = vcmp.ge.f32.partialorder %v534_v23, 0.0  ;;  %v662_v30 = vmul.f32 0.01, %v534_v23  ;;  %v526_v34 = vadd.f32 %v1146_v24, %v525_v28 }
 0x101   : > { %vm646_vm1 = vcmp.ge.f32.partialorder %v598_v25, 0.0  ;;  %v678_v31 = vmul.f32 0.01, %v598_v25  ;;  %v689_v32 = vsel %vm625_vm14, %v513_v17, %v657_v26  ;;  %v590_v35 = vadd.f32 %v1146_v24, %v589_v29  ;;  %v948_v36 = vpop.f32.mrf.mxu0  ;;  %v964_v37 = vpop.f32.mrf.mxu1 }
 0x102   : > { %v705_v33 = vsel %vm641_vm15, %v577_v18, %v673_v27  ;;  %721 = vst [vmem:[%s1154_s19 + $0x28] sm:$0xff] %v689_v32  ;;  %v694_v38 = vsel %vm630_vm0, %v534_v23, %v662_v30  ;;  %v537_v40 = vadd.f32 %v948_v36, %v1146_v24  ;;  %v601_v41 = vadd.f32 %v964_v37, %v1146_v24 }
 0x103   : > { %737 = vst [vmem:[%s1154_s19 + $0xa8] sm:$0xff] %v705_v33  ;;  %v710_v39 = vsel %vm646_vm1, %v598_v25, %v678_v31  ;;  %726 = vst [vmem:[%s1154_s19 + $0x50] sm:$0xff] %v694_v38  ;;  %vm628_vm2 = vcmp.ge.f32.partialorder %v526_v34, 0.0  ;;  %v660_v42 = vmul.f32 0.01, %v526_v34  ;;  %vm644_vm3 = vcmp.ge.f32.partialorder %v590_v35, 0.0  ;;  %v528_v44 = vpop.f32.mrf.mxu0  ;;  %v592_v45 = vpop.f32.mrf.mxu1 }
 0x104   : > { %742 = vst [vmem:[%s1154_s19 + $0xd0] sm:$0xff] %v710_v39  ;;  %v676_v43 = vmul.f32 0.01, %v590_v35  ;;  %vm631_vm4 = vcmp.ge.f32.partialorder %v537_v40, 0.0  ;;  %v663_v46 = vmul.f32 0.01, %v537_v40  ;;  %v529_v50 = vadd.f32 %v1146_v24, %v528_v44 }
 0x105   : > { %vm647_vm5 = vcmp.ge.f32.partialorder %v601_v41, 0.0  ;;  %v679_v47 = vmul.f32 0.01, %v601_v41  ;;  %v692_v48 = vsel %vm628_vm2, %v526_v34, %v660_v42  ;;  %v593_v51 = vadd.f32 %v1146_v24, %v592_v45  ;;  %v951_v52 = vpop.f32.mrf.mxu0  ;;  %v967_v53 = vpop.f32.mrf.mxu1 }
 0x106   : > { %v708_v49 = vsel %vm644_vm3, %v590_v35, %v676_v43  ;;  %724 = vst [vmem:[%s1154_s19 + $0x40] sm:$0xff] %v692_v48  ;;  %v695_v54 = vsel %vm631_vm4, %v537_v40, %v663_v46  ;;  %v550_v56 = vadd.f32 %v951_v52, %v1146_v24  ;;  %v614_v57 = vadd.f32 %v967_v53, %v1146_v24 }
 0x107   : > { %740 = vst [vmem:[%s1154_s19 + $0xc0] sm:$0xff] %v708_v49  ;;  %v711_v55 = vsel %vm647_vm5, %v601_v41, %v679_v47  ;;  %727 = vst [vmem:[%s1154_s19 + $0x58] sm:$0xff] %v695_v54  ;;  %vm629_vm6 = vcmp.ge.f32.partialorder %v529_v50, 0.0  ;;  %v661_v58 = vmul.f32 0.01, %v529_v50  ;;  %vm645_vm7 = vcmp.ge.f32.partialorder %v593_v51, 0.0  ;;  %v541_v60 = vpop.f32.mrf.mxu0  ;;  %v605_v61 = vpop.f32.mrf.mxu1 }
 0x108   : > { %743 = vst [vmem:[%s1154_s19 + $0xd8] sm:$0xff] %v711_v55  ;;  %v677_v59 = vmul.f32 0.01, %v593_v51  ;;  %vm634_vm8 = vcmp.ge.f32.partialorder %v550_v56, 0.0  ;;  %v666_v62 = vmul.f32 0.01, %v550_v56  ;;  %v542_v2 = vadd.f32 %v1146_v24, %v541_v60 }
 0x109   : > { %vm650_vm9 = vcmp.ge.f32.partialorder %v614_v57, 0.0  ;;  %v682_v63 = vmul.f32 0.01, %v614_v57  ;;  %v693_v0 = vsel %vm629_vm6, %v529_v50, %v661_v58  ;;  %v606_v3 = vadd.f32 %v1146_v24, %v605_v61  ;;  %v952_v4 = vpop.f32.mrf.mxu0  ;;  %v968_v5 = vpop.f32.mrf.mxu1 }
 0x10a   : > { %v709_v1 = vsel %vm645_vm7, %v593_v51, %v677_v59  ;;  %725 = vst [vmem:[%s1154_s19 + $0x48] sm:$0xff] %v693_v0  ;;  %v698_v6 = vsel %vm634_vm8, %v550_v56, %v666_v62  ;;  %v553_v8 = vadd.f32 %v952_v4, %v1146_v24  ;;  %v617_v9 = vadd.f32 %v968_v5, %v1146_v24 }
 0x10b   : > { %741 = vst [vmem:[%s1154_s19 + $0xc8] sm:$0xff] %v709_v1  ;;  %v714_v7 = vsel %vm650_vm9, %v614_v57, %v682_v63  ;;  %730 = vst [vmem:[%s1154_s19 + $0x70] sm:$0xff] %v698_v6  ;;  %vm632_vm10 = vcmp.ge.f32.partialorder %v542_v2, 0.0  ;;  %v664_v10 = vmul.f32 0.01, %v542_v2  ;;  %vm648_vm11 = vcmp.ge.f32.partialorder %v606_v3, 0.0  ;;  %v544_v12 = vpop.f32.mrf.mxu0  ;;  %v608_v13 = vpop.f32.mrf.mxu1 }
 0x10c   : > { %746 = vst [vmem:[%s1154_s19 + $0xf0] sm:$0xff] %v714_v7  ;;  %v680_v11 = vmul.f32 0.01, %v606_v3  ;;  %vm635_vm12 = vcmp.ge.f32.partialorder %v553_v8, 0.0  ;;  %v667_v14 = vmul.f32 0.01, %v553_v8  ;;  %v545_v18 = vadd.f32 %v1146_v24, %v544_v12 }
 0x10d   : > { %vm651_vm13 = vcmp.ge.f32.partialorder %v617_v9, 0.0  ;;  %v683_v15 = vmul.f32 0.01, %v617_v9  ;;  %v696_v16 = vsel %vm632_vm10, %v542_v2, %v664_v10  ;;  %v609_v19 = vadd.f32 %v1146_v24, %v608_v13 }
 0x10e   : > { %v712_v17 = vsel %vm648_vm11, %v606_v3, %v680_v11  ;;  %728 = vst [vmem:[%s1154_s19 + $0x60] sm:$0xff] %v696_v16  ;;  %v699_v20 = vsel %vm635_vm12, %v553_v8, %v667_v14  ;;  %vm633_vm14 = vcmp.ge.f32.partialorder %v545_v18, 0.0  ;;  %v665_v22 = vmul.f32 0.01, %v545_v18 }
 0x10f   : > { %744 = vst [vmem:[%s1154_s19 + $0xe0] sm:$0xff] %v712_v17  ;;  %v715_v21 = vsel %vm651_vm13, %v617_v9, %v683_v15  ;;  %731 = vst [vmem:[%s1154_s19 + $0x78] sm:$0xff] %v699_v20  ;;  %vm649_vm15 = vcmp.ge.f32.partialorder %v609_v19, 0.0  ;;  %v681_v23 = vmul.f32 0.01, %v609_v19 }
 0x110   : > { %747 = vst [vmem:[%s1154_s19 + $0xf8] sm:$0xff] %v715_v21  ;;  %v697_v25 = vsel %vm633_vm14, %v545_v18, %v665_v22 }
 0x111   : > { %v713_v26 = vsel %vm649_vm15, %v609_v19, %v681_v23  ;;  %729 = vst [vmem:[%s1154_s19 + $0x68] sm:$0xff] %v697_v25 }
 0x112   : > { %745 = vst [vmem:[%s1154_s19 + $0xe8] sm:$0xff] %v713_v26 }
 0x113 PF: > { %s13_s14 = sadd.s32 1, %s1055_s14   ;;  %s1231_s12 = smov %s1051_s13 }
 0x114   : > { %p10_p5 = scmp.ge.s32.totalorder %s13_s14, 4   ;;  %s1232_s13 = smov %s1234_s15 }
 0x116   :  { %12 = sbr.rel (!%p10_p5) target bundleno = 2 (0x2), region = 68 }

// kernel: _up_forward.4
= control target key start
LH: loop header
LB: loop body
LE: loop exit
PB: predicated region body
PF: predicated region fallthrough
CT: control target
= control target key end

     0   :  { %s1322_s12 = smov 0   ;;  %s1324_s13 = smov 0   ;;  %s1515_s0 = inlined_call_operand.vmem [shape: bf16[512,256], index: 0, kind: input, shape index: {}]   ;;  %s1516_s1 = inlined_call_operand.vmem [shape: bf16[256,128], index: 1, kind: input, shape index: {}]   ;;  %s1517_s2 = inlined_call_operand.vmem [shape: f32[1,128], index: 2, kind: input, shape index: {}]   ;;  %s1518_s3 = inlined_call_operand.vmem [shape: f32[512,128], index: 3, kind: output, shape index: {}]  }
   0x1   :  { %s1326_s14 = smov 0  }
   0x2 LB: > { %s32_s15 = sadd.s32 1, %s1296_s13  ;;  %p1004_p0 = scmp.ge.s32.totalorder %s1300_s14, 1  ;;  %s1300_s14 = sphi %s1326_s14, %s13_s14   ;;  %s1296_s13 = sphi %s1324_s13, %s1520_s13   ;;  %s1292_s12 = sphi %s1322_s12, %s1519_s12  }
   0x3   : > { %p34_p1 = scmp.ge.s32.totalorder %s32_s15, 2  ;;  %p191_p2 = scmp.lt.s32.totalorder %s1300_s14, 3 }
   0x5   : > { %s1522_s15 = smov (%p34_p1, %s32_s15), 0  ;;  %p192_p3 = pnand %p1004_p0, %p191_p2 }
   0x6   : > { %s1005_s18 = sshll.u32 (!%p192_p3), %s1292_s12, 5 }
   0x7   : > { %195 = sbr.rel (%p192_p3) target bundleno = 309 (0x135), region = 32  ;;  %p236_p4 = scmp.lt.s32.totalorder (!%p192_p3), %s1005_s18, 63 }
   0xc   : > { %v1214_v0 = vld [vmem:[%s1516_s1 + $0x78] sm:$0xff]   ;;  %v1216_v2 = vld [vmem:[%s1516_s1 + $0x70] sm:$0xff]   ;;  %v1218_v4 = vld [vmem:[%s1516_s1 + $0x68] sm:$0xff]   ;;  %s1524_s18 = smov (!%p236_p4, %s1005_s18), 63 }
   0xd   : > { %v1215_v1 = vld [vmem:[%s1516_s1 + $0x38] sm:$0xff]   ;;  %1062 = vmatprep.subr.bf16.mxu0 %v1214_v0  ;;  %1174 = vmatprep.subr.bf16.mxu1 %v1214_v0  ;;  %v1217_v3 = vld [vmem:[%s1516_s1 + $0x30] sm:$0xff]   ;;  %v1219_v5 = vld [vmem:[%s1516_s1 + $0x28] sm:$0xff]   ;;  %s1061_s6 = sshll.u32 %s1524_s18, 3 }
   0xe   : > { %1063 = vmatpush3.bf16.msra.mxu0 %v1215_v1  ;;  %1182 = vmatpush3.bf16.msra.mxu1 %v1215_v1  ;;  %v1220_v6 = vld [vmem:[%s1516_s1 + $0x60] sm:$0xff]   ;;  %v1222_v8 = vld [vmem:[%s1516_s1 + $0x58] sm:$0xff]   ;;  %s1375_s11 = scalar_lea.vmem %s1515_s0, %s1061_s6  ;;  %v1224_v10 = vld [vmem:[%s1516_s1 + $0x50] sm:$0xff]   ;;  %s1442_s8 = scalar_lea.vmem %s1518_s3, %s1061_s6 }
   0xf   : > { %1064 = vmatprep.subr.bf16.mxu0 %v1216_v2  ;;  %1175 = vmatprep.subr.bf16.mxu1 %v1216_v2  ;;  %v1221_v7 = vld [vmem:[%s1516_s1 + $0x20] sm:$0xff]   ;;  %v1223_v9 = vld [vmem:[%s1516_s1 + $0x18] sm:$0xff]   ;;  %v1225_v13 = vld [vmem:[%s1516_s1 + $0x10] sm:$0xff]  }
  0x10   : > { %v1232_v11 = vld [vmem:[%s1375_s11 + $0x4] ss:$8 sps:$4 sm:$0xff]   ;;  %v1230_v18 = vld [vmem:[%s1375_s11] ss:$8 sps:$4 sm:$0xff]   ;;  %v1236_v20 = vld [vmem:[%s1375_s11 + $0x14] ss:$8 sps:$4 sm:$0xff]  }
  0x11   : > { %v1235_v12 = vld [vmem:[%s1375_s11 + $0x84] ss:$8 sps:$4 sm:$0xff]   ;;  %627 = vmatprep.mubr.bf16.mxu0 %v1232_v11  ;;  %v1233_v19 = vld [vmem:[%s1375_s11 + $0x80] ss:$8 sps:$4 sm:$0xff]   ;;  %v1238_v21 = vld [vmem:[%s1375_s11 + $0x94] ss:$8 sps:$4 sm:$0xff]  }
  0x12   : > { %1065 = vmatpush3.bf16.msra.mxu0 %v1217_v3  ;;  %1183 = vmatpush3.bf16.msra.mxu1 %v1217_v3  ;;  %v1226_v14 = vld [vmem:[%s1516_s1 + $0x48] sm:$0xff]   ;;  %v1228_v16 = vld [vmem:[%s1516_s1 + $0x40] sm:$0xff]   ;;  %v1240_v22 = vld [vmem:[%s1375_s11 + $0x10] ss:$8 sps:$4 sm:$0xff]  }
  0x13   : > { %1066 = vmatprep.subr.bf16.mxu0 %v1218_v4  ;;  %1176 = vmatprep.subr.bf16.mxu1 %v1218_v4  ;;  %v1227_v15 = vld [vmem:[%s1516_s1 + $0x8] sm:$0xff]   ;;  %v1229_v17 = vld [vmem:[%s1516_s1] sm:$0xff]   ;;  %v1241_v23 = vld [vmem:[%s1375_s11 + $0x90] ss:$8 sps:$4 sm:$0xff]  }
  0x14   : > { %691 = vmatprep.mubr.bf16.mxu1 %v1235_v12  ;;  %v1242_v24 = vld [vmem:[%s1375_s11 + $0x24] ss:$8 sps:$4 sm:$0xff]   ;;  %v1246_v26 = vld [vmem:[%s1375_s11 + $0x20] ss:$8 sps:$4 sm:$0xff]   ;;  %v1248_v28 = vld [vmem:[%s1375_s11 + $0x34] ss:$8 sps:$4 sm:$0xff]  }
  0x15   : > { %v1244_v25 = vld [vmem:[%s1375_s11 + $0xa4] ss:$8 sps:$4 sm:$0xff]   ;;  %v1247_v27 = vld [vmem:[%s1375_s11 + $0xa0] ss:$8 sps:$4 sm:$0xff]   ;;  %v1250_v29 = vld [vmem:[%s1375_s11 + $0xb4] ss:$8 sps:$4 sm:$0xff]  }
  0x16   : > { %1067 = vmatpush3.bf16.msra.mxu0 %v1219_v5  ;;  %1184 = vmatpush3.bf16.msra.mxu1 %v1219_v5  ;;  %v1252_v30 = vld [vmem:[%s1375_s11 + $0x30] ss:$8 sps:$4 sm:$0xff]   ;;  %v1254_v32 = vld [vmem:[%s1375_s11 + $0x44] ss:$8 sps:$4 sm:$0xff]   ;;  %v1258_v34 = vld [vmem:[%s1375_s11 + $0x40] ss:$8 sps:$4 sm:$0xff]  }
  0x17   : > { %1068 = vmatprep.subr.bf16.mxu0 %v1220_v6  ;;  %1177 = vmatprep.subr.bf16.mxu1 %v1220_v6  ;;  %v1253_v31 = vld [vmem:[%s1375_s11 + $0xb0] ss:$8 sps:$4 sm:$0xff]   ;;  %v1256_v33 = vld [vmem:[%s1375_s11 + $0xc4] ss:$8 sps:$4 sm:$0xff]   ;;  %v1259_v35 = vld [vmem:[%s1375_s11 + $0xc0] ss:$8 sps:$4 sm:$0xff]  }
  0x18   : > { %v1260_v36 = vld [vmem:[%s1375_s11 + $0x54] ss:$8 sps:$4 sm:$0xff]   ;;  %v1264_v38 = vld [vmem:[%s1375_s11 + $0x50] ss:$8 sps:$4 sm:$0xff]   ;;  %v1266_v40 = vld [vmem:[%s1375_s11 + $0x64] ss:$8 sps:$4 sm:$0xff]  }
  0x19   : > { %v1262_v37 = vld [vmem:[%s1375_s11 + $0xd4] ss:$8 sps:$4 sm:$0xff]   ;;  %v1265_v39 = vld [vmem:[%s1375_s11 + $0xd0] ss:$8 sps:$4 sm:$0xff]   ;;  %v1268_v41 = vld [vmem:[%s1375_s11 + $0xe4] ss:$8 sps:$4 sm:$0xff]  }
  0x1a   : > { %1069 = vmatpush3.bf16.msra.mxu0 %v1221_v7  ;;  %1185 = vmatpush3.bf16.msra.mxu1 %v1221_v7  ;;  %v1270_v42 = vld [vmem:[%s1375_s11 + $0x60] ss:$8 sps:$4 sm:$0xff]   ;;  %v1272_v44 = vld [vmem:[%s1375_s11 + $0x74] ss:$8 sps:$4 sm:$0xff]   ;;  %v1276_v46 = vld [vmem:[%s1375_s11 + $0x70] ss:$8 sps:$4 sm:$0xff]  }
  0x1b   : > { %1070 = vmatprep.subr.bf16.mxu0 %v1222_v8  ;;  %1178 = vmatprep.subr.bf16.mxu1 %v1222_v8  ;;  %v1271_v43 = vld [vmem:[%s1375_s11 + $0xe0] ss:$8 sps:$4 sm:$0xff]   ;;  %v1274_v45 = vld [vmem:[%s1375_s11 + $0xf4] ss:$8 sps:$4 sm:$0xff]   ;;  %v1277_v47 = vld [vmem:[%s1375_s11 + $0xf0] ss:$8 sps:$4 sm:$0xff]  }
  0x1c   : > { %v1433_v50 = vld [vmem:[%s1517_s2] ss:$0 sm:$0xff] }
  0x1e   : > { %1071 = vmatpush3.bf16.msra.mxu0 %v1223_v9  ;;  %1186 = vmatpush3.bf16.msra.mxu1 %v1223_v9 }
  0x1f   : > { %1072 = vmatprep.subr.bf16.mxu0 %v1224_v10  ;;  %1179 = vmatprep.subr.bf16.mxu1 %v1224_v10 }
  0x22   : > { %1073 = vmatpush3.bf16.msra.mxu0 %v1225_v13  ;;  %1187 = vmatpush3.bf16.msra.mxu1 %v1225_v13 }
  0x23   : > { %1074 = vmatprep.subr.bf16.mxu0 %v1226_v14  ;;  %1180 = vmatprep.subr.bf16.mxu1 %v1226_v14 }
  0x26   : > { %1075 = vmatpush3.bf16.msra.mxu0 %v1227_v15  ;;  %1188 = vmatpush3.bf16.msra.mxu1 %v1227_v15 }
  0x27   : > { %1076 = vmatprep.subr.bf16.mxu0 %v1228_v16  ;;  %1181 = vmatprep.subr.bf16.mxu1 %v1228_v16 }
  0x2a   : > { %1077 = vmatpush3.bf16.msra.mxu0 %v1229_v17  ;;  %1189 = vmatpush3.bf16.msra.mxu1 %v1229_v17 }
  0x2d   : > { %628 = vmatmul.mubr.bf16.vlgmr.msra.gmra.mxu0 %v1230_v18  ;;  %692 = vmatmul.mubr.bf16.vlgmr.msra.gmra.mxu1 %v1233_v19 }
  0x2e   : > { %635 = vmatprep.mubr.bf16.mxu0 %v1236_v20  ;;  %699 = vmatprep.mubr.bf16.mxu1 %v1238_v21 }
  0x35   : > { %636 = vmatmul.mubr.bf16.gmra.mxu0 %v1240_v22  ;;  %700 = vmatmul.mubr.bf16.gmra.mxu1 %v1241_v23 }
  0x36   : > { %643 = vmatprep.mubr.bf16.mxu0 %v1242_v24  ;;  %707 = vmatprep.mubr.bf16.mxu1 %v1244_v25 }
  0x3d   : > { %644 = vmatmul.mubr.bf16.gmra.mxu0 %v1246_v26  ;;  %708 = vmatmul.mubr.bf16.gmra.mxu1 %v1247_v27 }
  0x3e   : > { %651 = vmatprep.mubr.bf16.mxu0 %v1248_v28  ;;  %715 = vmatprep.mubr.bf16.mxu1 %v1250_v29 }
  0x45   : > { %652 = vmatmul.mubr.bf16.gmra.mxu0 %v1252_v30  ;;  %716 = vmatmul.mubr.bf16.gmra.mxu1 %v1253_v31 }
  0x46   : > { %659 = vmatprep.mubr.bf16.mxu0 %v1254_v32  ;;  %723 = vmatprep.mubr.bf16.mxu1 %v1256_v33 }
  0x4d   : > { %660 = vmatmul.mubr.bf16.gmra.mxu0 %v1258_v34  ;;  %724 = vmatmul.mubr.bf16.gmra.mxu1 %v1259_v35 }
  0x4e   : > { %667 = vmatprep.mubr.bf16.mxu0 %v1260_v36  ;;  %731 = vmatprep.mubr.bf16.mxu1 %v1262_v37 }
  0x55   : > { %668 = vmatmul.mubr.bf16.gmra.mxu0 %v1264_v38  ;;  %732 = vmatmul.mubr.bf16.gmra.mxu1 %v1265_v39 }
  0x56   : > { %675 = vmatprep.mubr.bf16.mxu0 %v1266_v40  ;;  %739 = vmatprep.mubr.bf16.mxu1 %v1268_v41 }
  0x5d   : > { %676 = vmatmul.mubr.bf16.gmra.mxu0 %v1270_v42  ;;  %740 = vmatmul.mubr.bf16.gmra.mxu1 %v1271_v43 }
  0x5e   : > { %683 = vmatprep.mubr.bf16.mxu0 %v1272_v44  ;;  %747 = vmatprep.mubr.bf16.mxu1 %v1274_v45 }
  0x65   : > { %684 = vmatmul.mubr.bf16.gmra.mxu0 %v1276_v46  ;;  %748 = vmatmul.mubr.bf16.gmra.mxu1 %v1277_v47 }
  0xed   : > { %v1078_v48 = vpop.f32.mrf.mxu0  ;;  %v1126_v49 = vpop.f32.mrf.mxu1 }
  0xef   : > { %v1079_v51 = vpop.f32.mrf.mxu0  ;;  %v1127_v52 = vpop.f32.mrf.mxu1 }
  0xf0   : > { %v1080_v53 = vadd.f32 %v1079_v51, %v1078_v48  ;;  %v1128_v54 = vadd.f32 %v1127_v52, %v1126_v49 }
  0xf1   : > { %v1081_v55 = vpop.f32.mrf.mxu0  ;;  %v1129_v56 = vpop.f32.mrf.mxu1 }
  0xf2   : > { %v630_v57 = vadd.f32 %v1080_v53, %v1433_v50  ;;  %v694_v58 = vadd.f32 %v1128_v54, %v1433_v50 }
  0xf3   : > { %v1082_v59 = vpop.f32.mrf.mxu0  ;;  %v1130_v60 = vpop.f32.mrf.mxu1 }
  0xf4   : > { %vm756_vm0 = vcmp.ge.f32.partialorder %v630_v57, 0.0  ;;  %v788_v61 = vmul.f32 0.01, %v630_v57  ;;  %vm772_vm1 = vcmp.ge.f32.partialorder %v694_v58, 0.0  ;;  %v804_v62 = vmul.f32 0.01, %v694_v58 }
  0xf5   : > { %v1083_v63 = vadd.f32 %v1082_v59, %v1081_v55  ;;  %v1131_v0 = vadd.f32 %v1130_v60, %v1129_v56  ;;  %v1084_v1 = vpop.f32.mrf.mxu0  ;;  %v1132_v2 = vpop.f32.mrf.mxu1 }
  0xf6   : > { %v820_v3 = vsel %vm756_vm0, %v630_v57, %v788_v61  ;;  %v836_v4 = vsel %vm772_vm1, %v694_v58, %v804_v62 }
  0xf7   : > { %852 = vst [vmem:[%s1442_s8] sm:$0xff] %v820_v3  ;;  %868 = vst [vmem:[%s1442_s8 + $0x80] sm:$0xff] %v836_v4  ;;  %v633_v5 = vadd.f32 %v1083_v63, %v1433_v50  ;;  %v697_v6 = vadd.f32 %v1131_v0, %v1433_v50  ;;  %v1085_v7 = vpop.f32.mrf.mxu0  ;;  %v1133_v8 = vpop.f32.mrf.mxu1 }
  0xf8   : > { %v1086_v9 = vadd.f32 %v1085_v7, %v1084_v1  ;;  %v1134_v10 = vadd.f32 %v1133_v8, %v1132_v2 }
  0xf9   : > { %vm757_vm2 = vcmp.ge.f32.partialorder %v633_v5, 0.0  ;;  %v789_v11 = vmul.f32 0.01, %v633_v5  ;;  %vm773_vm3 = vcmp.ge.f32.partialorder %v697_v6, 0.0  ;;  %v805_v12 = vmul.f32 0.01, %v697_v6  ;;  %v1087_v13 = vpop.f32.mrf.mxu0  ;;  %v1135_v14 = vpop.f32.mrf.mxu1 }
  0xfa   : > { %v638_v15 = vadd.f32 %v1086_v9, %v1433_v50  ;;  %v702_v16 = vadd.f32 %v1134_v10, %v1433_v50 }
  0xfb   : > { %v821_v17 = vsel %vm757_vm2, %v633_v5, %v789_v11  ;;  %v837_v18 = vsel %vm773_vm3, %v697_v6, %v805_v12  ;;  %v1088_v19 = vpop.f32.mrf.mxu0  ;;  %v1136_v20 = vpop.f32.mrf.mxu1 }
  0xfc   : > { %853 = vst [vmem:[%s1442_s8 + $0x8] sm:$0xff] %v821_v17  ;;  %869 = vst [vmem:[%s1442_s8 + $0x88] sm:$0xff] %v837_v18  ;;  %vm758_vm4 = vcmp.ge.f32.partialorder %v638_v15, 0.0  ;;  %v790_v21 = vmul.f32 0.01, %v638_v15  ;;  %vm774_vm5 = vcmp.ge.f32.partialorder %v702_v16, 0.0  ;;  %v1089_v23 = vadd.f32 %v1088_v19, %v1087_v13 }
  0xfd   : > { %v806_v22 = vmul.f32 0.01, %v702_v16  ;;  %v1137_v24 = vadd.f32 %v1136_v20, %v1135_v14  ;;  %v1090_v25 = vpop.f32.mrf.mxu0  ;;  %v1138_v26 = vpop.f32.mrf.mxu1 }
  0xfe   : > { %v822_v27 = vsel %vm758_vm4, %v638_v15, %v790_v21  ;;  %v641_v29 = vadd.f32 %v1089_v23, %v1433_v50 }
  0xff   : > { %v838_v28 = vsel %vm774_vm5, %v702_v16, %v806_v22  ;;  %854 = vst [vmem:[%s1442_s8 + $0x10] sm:$0xff] %v822_v27  ;;  %v705_v30 = vadd.f32 %v1137_v24, %v1433_v50  ;;  %v1091_v31 = vpop.f32.mrf.mxu0  ;;  %v1139_v32 = vpop.f32.mrf.mxu1 }
 0x100   : > { %870 = vst [vmem:[%s1442_s8 + $0x90] sm:$0xff] %v838_v28  ;;  %v1092_v33 = vadd.f32 %v1091_v31, %v1090_v25  ;;  %v1140_v34 = vadd.f32 %v1139_v32, %v1138_v26  ;;  %vm759_vm6 = vcmp.ge.f32.partialorder %v641_v29, 0.0  ;;  %v791_v35 = vmul.f32 0.01, %v641_v29 }
 0x101   : > { %vm775_vm7 = vcmp.ge.f32.partialorder %v705_v30, 0.0  ;;  %v807_v36 = vmul.f32 0.01, %v705_v30  ;;  %v1093_v37 = vpop.f32.mrf.mxu0  ;;  %v1141_v38 = vpop.f32.mrf.mxu1 }
 0x102   : > { %v646_v39 = vadd.f32 %v1092_v33, %v1433_v50  ;;  %v710_v40 = vadd.f32 %v1140_v34, %v1433_v50  ;;  %v823_v41 = vsel %vm759_vm6, %v641_v29, %v791_v35 }
 0x103   : > { %v839_v42 = vsel %vm775_vm7, %v705_v30, %v807_v36  ;;  %v1094_v43 = vpop.f32.mrf.mxu0  ;;  %v1142_v44 = vpop.f32.mrf.mxu1  ;;  %855 = vst [vmem:[%s1442_s8 + $0x18] sm:$0xff] %v823_v41 }
 0x104   : > { %871 = vst [vmem:[%s1442_s8 + $0x98] sm:$0xff] %v839_v42  ;;  %vm760_vm8 = vcmp.ge.f32.partialorder %v646_v39, 0.0  ;;  %v792_v45 = vmul.f32 0.01, %v646_v39  ;;  %vm776_vm9 = vcmp.ge.f32.partialorder %v710_v40, 0.0  ;;  %v1095_v47 = vadd.f32 %v1094_v43, %v1093_v37 }
 0x105   : > { %v808_v46 = vmul.f32 0.01, %v710_v40  ;;  %v1143_v48 = vadd.f32 %v1142_v44, %v1141_v38  ;;  %v1096_v49 = vpop.f32.mrf.mxu0  ;;  %v1144_v51 = vpop.f32.mrf.mxu1 }
 0x106   : > { %v824_v52 = vsel %vm760_vm8, %v646_v39, %v792_v45  ;;  %v649_v54 = vadd.f32 %v1095_v47, %v1433_v50 }
 0x107   : > { %v840_v53 = vsel %vm776_vm9, %v710_v40, %v808_v46  ;;  %856 = vst [vmem:[%s1442_s8 + $0x20] sm:$0xff] %v824_v52  ;;  %v713_v55 = vadd.f32 %v1143_v48, %v1433_v50  ;;  %v1097_v56 = vpop.f32.mrf.mxu0  ;;  %v1145_v57 = vpop.f32.mrf.mxu1 }
 0x108   : > { %872 = vst [vmem:[%s1442_s8 + $0xa0] sm:$0xff] %v840_v53  ;;  %v1098_v58 = vadd.f32 %v1097_v56, %v1096_v49  ;;  %v1146_v59 = vadd.f32 %v1145_v57, %v1144_v51  ;;  %vm761_vm10 = vcmp.ge.f32.partialorder %v649_v54, 0.0  ;;  %v793_v60 = vmul.f32 0.01, %v649_v54 }
 0x109   : > { %vm777_vm11 = vcmp.ge.f32.partialorder %v713_v55, 0.0  ;;  %v809_v61 = vmul.f32 0.01, %v713_v55  ;;  %v1099_v62 = vpop.f32.mrf.mxu0  ;;  %v1147_v63 = vpop.f32.mrf.mxu1 }
 0x10a   : > { %v654_v0 = vadd.f32 %v1098_v58, %v1433_v50  ;;  %v718_v1 = vadd.f32 %v1146_v59, %v1433_v50  ;;  %v825_v2 = vsel %vm761_vm10, %v649_v54, %v793_v60 }
 0x10b   : > { %v841_v3 = vsel %vm777_vm11, %v713_v55, %v809_v61  ;;  %v1100_v4 = vpop.f32.mrf.mxu0  ;;  %v1148_v5 = vpop.f32.mrf.mxu1  ;;  %857 = vst [vmem:[%s1442_s8 + $0x28] sm:$0xff] %v825_v2 }
 0x10c   : > { %873 = vst [vmem:[%s1442_s8 + $0xa8] sm:$0xff] %v841_v3  ;;  %vm762_vm12 = vcmp.ge.f32.partialorder %v654_v0, 0.0  ;;  %v794_v6 = vmul.f32 0.01, %v654_v0  ;;  %vm778_vm13 = vcmp.ge.f32.partialorder %v718_v1, 0.0  ;;  %v1101_v8 = vadd.f32 %v1100_v4, %v1099_v62 }
 0x10d   : > { %v810_v7 = vmul.f32 0.01, %v718_v1  ;;  %v1149_v9 = vadd.f32 %v1148_v5, %v1147_v63  ;;  %v1102_v10 = vpop.f32.mrf.mxu0  ;;  %v1150_v11 = vpop.f32.mrf.mxu1 }
 0x10e   : > { %v826_v12 = vsel %vm762_vm12, %v654_v0, %v794_v6  ;;  %v657_v14 = vadd.f32 %v1101_v8, %v1433_v50 }
 0x10f   : > { %v842_v13 = vsel %vm778_vm13, %v718_v1, %v810_v7  ;;  %858 = vst [vmem:[%s1442_s8 + $0x30] sm:$0xff] %v826_v12  ;;  %v721_v15 = vadd.f32 %v1149_v9, %v1433_v50  ;;  %v1103_v16 = vpop.f32.mrf.mxu0  ;;  %v1151_v17 = vpop.f32.mrf.mxu1 }
 0x110   : > { %874 = vst [vmem:[%s1442_s8 + $0xb0] sm:$0xff] %v842_v13  ;;  %v1104_v18 = vadd.f32 %v1103_v16, %v1102_v10  ;;  %v1152_v19 = vadd.f32 %v1151_v17, %v1150_v11  ;;  %vm763_vm14 = vcmp.ge.f32.partialorder %v657_v14, 0.0  ;;  %v795_v20 = vmul.f32 0.01, %v657_v14 }
 0x111   : > { %vm779_vm15 = vcmp.ge.f32.partialorder %v721_v15, 0.0  ;;  %v811_v21 = vmul.f32 0.01, %v721_v15  ;;  %v1105_v22 = vpop.f32.mrf.mxu0  ;;  %v1153_v23 = vpop.f32.mrf.mxu1 }
 0x112   : > { %v662_v24 = vadd.f32 %v1104_v18, %v1433_v50  ;;  %v726_v25 = vadd.f32 %v1152_v19, %v1433_v50  ;;  %v827_v26 = vsel %vm763_vm14, %v657_v14, %v795_v20 }
 0x113   : > { %v843_v27 = vsel %vm779_vm15, %v721_v15, %v811_v21  ;;  %v1106_v28 = vpop.f32.mrf.mxu0  ;;  %v1154_v29 = vpop.f32.mrf.mxu1  ;;  %859 = vst [vmem:[%s1442_s8 + $0x38] sm:$0xff] %v827_v26 }
 0x114   : > { %875 = vst [vmem:[%s1442_s8 + $0xb8] sm:$0xff] %v843_v27  ;;  %vm764_vm0 = vcmp.ge.f32.partialorder %v662_v24, 0.0  ;;  %v796_v30 = vmul.f32 0.01, %v662_v24  ;;  %vm780_vm1 = vcmp.ge.f32.partialorder %v726_v25, 0.0  ;;  %v1107_v32 = vadd.f32 %v1106_v28, %v1105_v22 }
 0x115   : > { %v812_v31 = vmul.f32 0.01, %v726_v25  ;;  %v1155_v33 = vadd.f32 %v1154_v29, %v1153_v23  ;;  %v1108_v34 = vpop.f32.mrf.mxu0  ;;  %v1156_v35 = vpop.f32.mrf.mxu1 }
 0x116   : > { %v828_v36 = vsel %vm764_vm0, %v662_v24, %v796_v30  ;;  %v665_v38 = vadd.f32 %v1107_v32, %v1433_v50 }
 0x117   : > { %v844_v37 = vsel %vm780_vm1, %v726_v25, %v812_v31  ;;  %860 = vst [vmem:[%s1442_s8 + $0x40] sm:$0xff] %v828_v36  ;;  %v729_v39 = vadd.f32 %v1155_v33, %v1433_v50  ;;  %v1109_v40 = vpop.f32.mrf.mxu0  ;;  %v1157_v41 = vpop.f32.mrf.mxu1 }
 0x118   : > { %876 = vst [vmem:[%s1442_s8 + $0xc0] sm:$0xff] %v844_v37  ;;  %v1110_v42 = vadd.f32 %v1109_v40, %v1108_v34  ;;  %v1158_v43 = vadd.f32 %v1157_v41, %v1156_v35  ;;  %vm765_vm2 = vcmp.ge.f32.partialorder %v665_v38, 0.0  ;;  %v797_v44 = vmul.f32 0.01, %v665_v38 }
 0x119   : > { %vm781_vm3 = vcmp.ge.f32.partialorder %v729_v39, 0.0  ;;  %v813_v45 = vmul.f32 0.01, %v729_v39  ;;  %v1111_v46 = vpop.f32.mrf.mxu0  ;;  %v1159_v47 = vpop.f32.mrf.mxu1 }
 0x11a   : > { %v670_v48 = vadd.f32 %v1110_v42, %v1433_v50  ;;  %v734_v49 = vadd.f32 %v1158_v43, %v1433_v50  ;;  %v829_v51 = vsel %vm765_vm2, %v665_v38, %v797_v44 }
 0x11b   : > { %v845_v52 = vsel %vm781_vm3, %v729_v39, %v813_v45  ;;  %v1112_v53 = vpop.f32.mrf.mxu0  ;;  %v1160_v54 = vpop.f32.mrf.mxu1  ;;  %861 = vst [vmem:[%s1442_s8 + $0x48] sm:$0xff] %v829_v51 }
 0x11c   : > { %877 = vst [vmem:[%s1442_s8 + $0xc8] sm:$0xff] %v845_v52  ;;  %vm766_vm4 = vcmp.ge.f32.partialorder %v670_v48, 0.0  ;;  %v798_v55 = vmul.f32 0.01, %v670_v48  ;;  %vm782_vm5 = vcmp.ge.f32.partialorder %v734_v49, 0.0  ;;  %v1113_v57 = vadd.f32 %v1112_v53, %v1111_v46 }
 0x11d   : > { %v814_v56 = vmul.f32 0.01, %v734_v49  ;;  %v1161_v58 = vadd.f32 %v1160_v54, %v1159_v47  ;;  %v1114_v59 = vpop.f32.mrf.mxu0  ;;  %v1162_v60 = vpop.f32.mrf.mxu1 }
 0x11e   : > { %v830_v61 = vsel %vm766_vm4, %v670_v48, %v798_v55  ;;  %v673_v63 = vadd.f32 %v1113_v57, %v1433_v50 }
 0x11f   : > { %v846_v62 = vsel %vm782_vm5, %v734_v49, %v814_v56  ;;  %862 = vst [vmem:[%s1442_s8 + $0x50] sm:$0xff] %v830_v61  ;;  %v737_v0 = vadd.f32 %v1161_v58, %v1433_v50  ;;  %v1115_v1 = vpop.f32.mrf.mxu0  ;;  %v1163_v2 = vpop.f32.mrf.mxu1 }
 0x120   : > { %878 = vst [vmem:[%s1442_s8 + $0xd0] sm:$0xff] %v846_v62  ;;  %v1116_v3 = vadd.f32 %v1115_v1, %v1114_v59  ;;  %v1164_v4 = vadd.f32 %v1163_v2, %v1162_v60  ;;  %vm767_vm6 = vcmp.ge.f32.partialorder %v673_v63, 0.0  ;;  %v799_v5 = vmul.f32 0.01, %v673_v63 }
 0x121   : > { %vm783_vm7 = vcmp.ge.f32.partialorder %v737_v0, 0.0  ;;  %v815_v6 = vmul.f32 0.01, %v737_v0  ;;  %v1117_v7 = vpop.f32.mrf.mxu0  ;;  %v1165_v8 = vpop.f32.mrf.mxu1 }
 0x122   : > { %v678_v9 = vadd.f32 %v1116_v3, %v1433_v50  ;;  %v742_v10 = vadd.f32 %v1164_v4, %v1433_v50  ;;  %v831_v11 = vsel %vm767_vm6, %v673_v63, %v799_v5 }
 0x123   : > { %v847_v12 = vsel %vm783_vm7, %v737_v0, %v815_v6  ;;  %v1118_v13 = vpop.f32.mrf.mxu0  ;;  %v1166_v14 = vpop.f32.mrf.mxu1  ;;  %863 = vst [vmem:[%s1442_s8 + $0x58] sm:$0xff] %v831_v11 }
 0x124   : > { %879 = vst [vmem:[%s1442_s8 + $0xd8] sm:$0xff] %v847_v12  ;;  %vm768_vm8 = vcmp.ge.f32.partialorder %v678_v9, 0.0  ;;  %v800_v15 = vmul.f32 0.01, %v678_v9  ;;  %vm784_vm9 = vcmp.ge.f32.partialorder %v742_v10, 0.0  ;;  %v1119_v17 = vadd.f32 %v1118_v13, %v1117_v7 }
 0x125   : > { %v816_v16 = vmul.f32 0.01, %v742_v10  ;;  %v1167_v18 = vadd.f32 %v1166_v14, %v1165_v8  ;;  %v1120_v19 = vpop.f32.mrf.mxu0  ;;  %v1168_v20 = vpop.f32.mrf.mxu1 }
 0x126   : > { %v832_v21 = vsel %vm768_vm8, %v678_v9, %v800_v15  ;;  %v681_v23 = vadd.f32 %v1119_v17, %v1433_v50 }
 0x127   : > { %v848_v22 = vsel %vm784_vm9, %v742_v10, %v816_v16  ;;  %864 = vst [vmem:[%s1442_s8 + $0x60] sm:$0xff] %v832_v21  ;;  %v745_v24 = vadd.f32 %v1167_v18, %v1433_v50  ;;  %v1121_v25 = vpop.f32.mrf.mxu0  ;;  %v1169_v26 = vpop.f32.mrf.mxu1 }
 0x128   : > { %880 = vst [vmem:[%s1442_s8 + $0xe0] sm:$0xff] %v848_v22  ;;  %v1122_v27 = vadd.f32 %v1121_v25, %v1120_v19  ;;  %v1170_v28 = vadd.f32 %v1169_v26, %v1168_v20  ;;  %vm769_vm10 = vcmp.ge.f32.partialorder %v681_v23, 0.0  ;;  %v801_v29 = vmul.f32 0.01, %v681_v23 }
 0x129   : > { %vm785_vm11 = vcmp.ge.f32.partialorder %v745_v24, 0.0  ;;  %v817_v30 = vmul.f32 0.01, %v745_v24  ;;  %v1123_v31 = vpop.f32.mrf.mxu0  ;;  %v1171_v32 = vpop.f32.mrf.mxu1 }
 0x12a   : > { %v686_v33 = vadd.f32 %v1122_v27, %v1433_v50  ;;  %v750_v34 = vadd.f32 %v1170_v28, %v1433_v50  ;;  %v833_v35 = vsel %vm769_vm10, %v681_v23, %v801_v29 }
 0x12b   : > { %v849_v36 = vsel %vm785_vm11, %v745_v24, %v817_v30  ;;  %v1124_v37 = vpop.f32.mrf.mxu0  ;;  %v1172_v38 = vpop.f32.mrf.mxu1  ;;  %865 = vst [vmem:[%s1442_s8 + $0x68] sm:$0xff] %v833_v35 }
 0x12c   : > { %881 = vst [vmem:[%s1442_s8 + $0xe8] sm:$0xff] %v849_v36  ;;  %vm770_vm12 = vcmp.ge.f32.partialorder %v686_v33, 0.0  ;;  %v802_v39 = vmul.f32 0.01, %v686_v33  ;;  %vm786_vm13 = vcmp.ge.f32.partialorder %v750_v34, 0.0  ;;  %v1125_v41 = vadd.f32 %v1124_v37, %v1123_v31 }
 0x12d   : > { %v818_v40 = vmul.f32 0.01, %v750_v34  ;;  %v1173_v42 = vadd.f32 %v1172_v38, %v1171_v32 }
 0x12e   : > { %v834_v43 = vsel %vm770_vm12, %v686_v33, %v802_v39  ;;  %v689_v45 = vadd.f32 %v1125_v41, %v1433_v50 }
 0x12f   : > { %v850_v44 = vsel %vm786_vm13, %v750_v34, %v818_v40  ;;  %866 = vst [vmem:[%s1442_s8 + $0x70] sm:$0xff] %v834_v43  ;;  %v753_v46 = vadd.f32 %v1173_v42, %v1433_v50 }
 0x130   : > { %882 = vst [vmem:[%s1442_s8 + $0xf0] sm:$0xff] %v850_v44  ;;  %vm771_vm14 = vcmp.ge.f32.partialorder %v689_v45, 0.0  ;;  %v803_v47 = vmul.f32 0.01, %v689_v45 }
 0x131   : > { %vm787_vm15 = vcmp.ge.f32.partialorder %v753_v46, 0.0  ;;  %v819_v48 = vmul.f32 0.01, %v753_v46 }
 0x132   : > { %v835_v49 = vsel %vm771_vm14, %v689_v45, %v803_v47 }
 0x133   : > { %v851_v51 = vsel %vm787_vm15, %v753_v46, %v819_v48  ;;  %867 = vst [vmem:[%s1442_s8 + $0x78] sm:$0xff] %v835_v49 }
 0x134   : > { %883 = vst [vmem:[%s1442_s8 + $0xf8] sm:$0xff] %v851_v51 }
 0x135 PF: > { %s13_s14 = sadd.s32 1, %s1300_s14   ;;  %s1519_s12 = smov %s1296_s13 }
 0x136   : > { %p10_p5 = scmp.ge.s32.totalorder %s13_s14, 4   ;;  %s1520_s13 = smov %s1522_s15 }
 0x138   :  { %12 = sbr.rel (!%p10_p5) target bundleno = 2 (0x2), region = 68 }

</bundles_post_ra>
